<compile_context>
chip_gen: v7x
topology: tpu7x:2x2x1
jax: 0.10.0
libtpu: 0.0.40
codegen_flags: <defaults>
</compile_context>

<pallas_src>
import math
import jax
import jax.numpy as jnp
from jax.experimental import pallas as pl
from jax.experimental.pallas import tpu as pltpu


N_PAD = 128  # lane-dense width for the final (action) dimension


def _round_up(x, m):
    return ((x + m - 1) // m) * m


def actor_kernel(x_ref, w1_ref, b1_ref, w2_ref, b2_ref, w3_ref, b3_ref, out_ref):
    # Layer 1: Linear + ReLU (bf16 operands, f32 accumulation)
    h1 = jnp.dot(x_ref[...], w1_ref[...], preferred_element_type=jnp.float32)
    h1 = jnp.maximum(h1 + b1_ref[...], 0.0).astype(w2_ref.dtype)
    # Layer 2: Linear + ReLU
    h2 = jnp.dot(h1, w2_ref[...], preferred_element_type=jnp.float32)
    h2 = jnp.maximum(h2 + b2_ref[...], 0.0).astype(w3_ref.dtype)
    # Mean layer: Linear + tanh  (matches `mean = torch.tanh(self.mean_layer(x))`)
    m = jnp.dot(h2, w3_ref[...], preferred_element_type=jnp.float32) + b3_ref[...]
    out_ref[...] = jnp.tanh(m).astype(out_ref.dtype)


def actor_forward(x, params, *, batch_tile=None, compute_dtype=jnp.bfloat16):
    """x: (B, obs_dim) float32.  params: pre-transposed weights (in, out), biases (1, out)."""
    B, obs_dim = x.shape
    w1, b1 = params["w1"], params["b1"]
    w2, b2 = params["w2"], params["b2"]
    w3, b3 = params["w3"], params["b3"]
    hidden_1 = w1.shape[1]
    hidden_2 = w2.shape[1]
    action_dim = w3.shape[1]

    # --- Lane-pad the last layer to N_PAD outputs (unmasked full-lane stores) ---
    n_out = _round_up(max(action_dim, N_PAD), N_PAD)
    w3p = jnp.zeros((hidden_2, n_out), w3.dtype).at[:, :action_dim].set(w3)
    b3p = jnp.zeros((1, n_out), b3.dtype).at[:, :action_dim].set(b3)

    # --- bf16 matmul operands, f32 biases (added after f32 accumulation) ---
    xc = x.astype(compute_dtype)
    w1c = w1.astype(compute_dtype)
    w2c = w2.astype(compute_dtype)
    w3c = w3p.astype(compute_dtype)
    b1f = b1.astype(jnp.float32)
    b2f = b2.astype(jnp.float32)
    b3f = b3p.astype(jnp.float32)

    # --- Batch tiling: large tiles amortize the ~0.35us/step grid overhead;
    #     at large B this yields a multi-step 'parallel' grid for v7x megacore.
    if batch_tile is None:
        tb = min(512, _round_up(B, 8))
    else:
        tb = batch_tile
    tb = max(8, _round_up(tb, 8))
    B_pad = _round_up(B, tb)
    if B_pad != B:
        xc = jnp.pad(xc, ((0, B_pad - B), (0, 0)))
    grid = (B_pad // tb,)

    in_specs = [
        pl.BlockSpec((tb, obs_dim), lambda i: (i, 0)),         # x tile (batch-tiled)
        pl.BlockSpec((obs_dim, hidden_1), lambda i: (0, 0)),   # w1 (resident)
        pl.BlockSpec((1, hidden_1), lambda i: (0, 0)),         # b1
        pl.BlockSpec((hidden_1, hidden_2), lambda i: (0, 0)),  # w2
        pl.BlockSpec((1, hidden_2), lambda i: (0, 0)),         # b2
        pl.BlockSpec((hidden_2, n_out), lambda i: (0, 0)),     # w3 (lane-padded)
        pl.BlockSpec((1, n_out), lambda i: (0, 0)),            # b3 (lane-padded)
    ]
    out_spec = pl.BlockSpec((tb, n_out), lambda i: (i, 0))     # lane-dense output tile

    out = pl.pallas_call(
        actor_kernel,
        out_shape=jax.ShapeDtypeStruct((B_pad, n_out), jnp.float32),
        grid_spec=pl.GridSpec(
            grid=grid,
            in_specs=in_specs,
            out_specs=out_spec,
        ),
        compiler_params=pltpu.CompilerParams(
            dimension_semantics=("parallel",),
        ),
    )(xc, w1c, b1f, w2c, b2f, w3c, b3f)

    # Slice off padded batch rows and padded action lanes.
    return out[:B, :action_dim]


def init_actor_params(key, obs_dim, action_dim, hidden_1=128, hidden_2=128):
    """PyTorch nn.Linear-style init: U(-1/sqrt(fan_in), 1/sqrt(fan_in)).
    Weights stored pre-transposed as (in, out); biases as (1, out)."""
    keys = jax.random.split(key, 6)

    def linear(kw, kb, fan_in, fan_out):
        bound = 1.0 / math.sqrt(fan_in)
        w = jax.random.uniform(kw, (fan_in, fan_out), jnp.float32, -bound, bound)
        b = jax.random.uniform(kb, (1, fan_out), jnp.float32, -bound, bound)
        return w, b

    w1, b1 = linear(keys[0], keys[1], obs_dim, hidden_1)
    w2, b2 = linear(keys[2], keys[3], hidden_1, hidden_2)
    w3, b3 = linear(keys[4], keys[5], hidden_2, action_dim)
    return {"w1": w1, "b1": b1, "w2": w2, "b2": b2, "w3": w3, "b3": b3}


def actor_reference_bf16(x, params, compute_dtype=jnp.bfloat16):
    """Reference matching the kernel's numerics (bf16 operands, f32 accumulation)."""
    w1 = params["w1"].astype(compute_dtype)
    w2 = params["w2"].astype(compute_dtype)
    w3 = params["w3"].astype(compute_dtype)
    h1 = jnp.dot(x.astype(compute_dtype), w1, preferred_element_type=jnp.float32)
    h1 = jnp.maximum(h1 + params["b1"], 0.0).astype(compute_dtype)
    h2 = jnp.dot(h1, w2, preferred_element_type=jnp.float32)
    h2 = jnp.maximum(h2 + params["b2"], 0.0).astype(compute_dtype)
    return jnp.tanh(jnp.dot(h2, w3, preferred_element_type=jnp.float32) + params["b3"])


def actor_reference_f32(x, params):
    h1 = jnp.maximum(x @ params["w1"] + params["b1"], 0.0)
    h2 = jnp.maximum(h1 @ params["w2"] + params["b2"], 0.0)
    return jnp.tanh(h2 @ params["w3"] + params["b3"])


if __name__ == "__main__":
    key = jax.random.PRNGKey(0)
    k_params, k_x = jax.random.split(key)

    batch = 8
    obs_dim = 32
    action_dim = 8
    hidden_1 = 128
    hidden_2 = 128

    params = init_actor_params(k_params, obs_dim, action_dim, hidden_1, hidden_2)
    x = jax.random.normal(k_x, (batch, obs_dim), dtype=jnp.float32)

    out = jax.block_until_ready(actor_forward(x, params))
    assert out.shape == (batch, action_dim)

    ref_bf16 = jax.block_until_ready(actor_reference_bf16(x, params))
    ref_f32 = jax.block_until_ready(actor_reference_f32(x, params))
    assert jnp.allclose(out, ref_bf16, atol=2e-3, rtol=2e-3), "mismatch vs bf16-matched reference"
    assert jnp.allclose(out, ref_f32, atol=5e-2, rtol=5e-2), "mismatch vs f32 reference"

    # Exercise the batch-padding / row-slicing path (B not a multiple of 8).
    x2 = jax.random.normal(jax.random.PRNGKey(1), (6, obs_dim), dtype=jnp.float32)
    out2 = jax.block_until_ready(actor_forward(x2, params))
    assert out2.shape == (6, action_dim)
    assert jnp.allclose(out2, actor_reference_bf16(x2, params), atol=2e-3, rtol=2e-3)

    print("KERNEL_OK")
</pallas_src>

<mosaic_0001>
module attributes {stable_mosaic.version = 11 : i64} {
  func.func @actor_kernel(%arg0: i32, %arg1: memref<8x32xbf16, #tpu.memory_space<vmem>>, %arg2: memref<32x128xbf16, #tpu.memory_space<vmem>>, %arg3: memref<1x128xf32, #tpu.memory_space<vmem>>, %arg4: memref<128x128xbf16, #tpu.memory_space<vmem>>, %arg5: memref<1x128xf32, #tpu.memory_space<vmem>>, %arg6: memref<128x128xbf16, #tpu.memory_space<vmem>>, %arg7: memref<1x128xf32, #tpu.memory_space<vmem>>, %arg8: memref<8x128xf32, #tpu.memory_space<vmem>>) attributes {dimension_semantics = [#tpu.dimension_semantics<parallel>], iteration_bounds = array<i64: 1>, scalar_prefetch = 0 : i64, scratch_operands = 0 : i64, tpu.core_type = #tpu.core_type<tc>, window_params = [{transform_indices = @transform_0, window_bounds = array<i64: 8, 32>}, {pipeline_mode = #tpu.pipeline_mode<synchronous>, transform_indices = @transform_1, window_bounds = array<i64: 32, 128>}, {pipeline_mode = #tpu.pipeline_mode<synchronous>, transform_indices = @transform_2, window_bounds = array<i64: 1, 128>}, {pipeline_mode = #tpu.pipeline_mode<synchronous>, transform_indices = @transform_3, window_bounds = array<i64: 128, 128>}, {pipeline_mode = #tpu.pipeline_mode<synchronous>, transform_indices = @transform_4, window_bounds = array<i64: 1, 128>}, {pipeline_mode = #tpu.pipeline_mode<synchronous>, transform_indices = @transform_5, window_bounds = array<i64: 128, 128>}, {pipeline_mode = #tpu.pipeline_mode<synchronous>, transform_indices = @transform_6, window_bounds = array<i64: 1, 128>}, {transform_indices = @transform_7, window_bounds = array<i64: 8, 128>}]} {
    %c0 = arith.constant 0 : index
    %c0_0 = arith.constant 0 : index
    %0 = vector.load %arg1[%c0, %c0_0] : memref<8x32xbf16, #tpu.memory_space<vmem>>, vector<8x32xbf16>
    %c0_1 = arith.constant 0 : index
    %c0_2 = arith.constant 0 : index
    %1 = vector.load %arg2[%c0_1, %c0_2] : memref<32x128xbf16, #tpu.memory_space<vmem>>, vector<32x128xbf16>
    %cst = arith.constant dense<0.000000e+00> : vector<8x128xf32>
    %2 = tpu.matmul %0, %1, %cst {dimension_numbers = #tpu.dot_dimension_numbers<[1], [0], [0], [1], [0, 0, 1, 1], [], []>} : vector<8x32xbf16>, vector<32x128xbf16>, vector<8x128xf32> -> vector<8x128xf32>
    %c0_3 = arith.constant 0 : index
    %c0_4 = arith.constant 0 : index
    %3 = vector.load %arg3[%c0_3, %c0_4] : memref<1x128xf32, #tpu.memory_space<vmem>>, vector<1x128xf32>
    %4 = vector.broadcast %3 : vector<1x128xf32> to vector<8x128xf32>
    %5 = arith.addf %2, %4 : vector<8x128xf32>
    %cst_5 = arith.constant 0.000000e+00 : f32
    %6 = vector.broadcast %cst_5 : f32 to vector<8x128xf32>
    %7 = arith.maximumf %5, %6 : vector<8x128xf32>
    %8 = arith.truncf %7 : vector<8x128xf32> to vector<8x128xbf16>
    %c0_6 = arith.constant 0 : index
    %c0_7 = arith.constant 0 : index
    %9 = vector.load %arg4[%c0_6, %c0_7] : memref<128x128xbf16, #tpu.memory_space<vmem>>, vector<128x128xbf16>
    %cst_8 = arith.constant dense<0.000000e+00> : vector<8x128xf32>
    %10 = tpu.matmul %8, %9, %cst_8 {dimension_numbers = #tpu.dot_dimension_numbers<[1], [0], [0], [1], [0, 0, 1, 1], [], []>} : vector<8x128xbf16>, vector<128x128xbf16>, vector<8x128xf32> -> vector<8x128xf32>
    %c0_9 = arith.constant 0 : index
    %c0_10 = arith.constant 0 : index
    %11 = vector.load %arg5[%c0_9, %c0_10] : memref<1x128xf32, #tpu.memory_space<vmem>>, vector<1x128xf32>
    %12 = vector.broadcast %11 : vector<1x128xf32> to vector<8x128xf32>
    %13 = arith.addf %10, %12 : vector<8x128xf32>
    %cst_11 = arith.constant 0.000000e+00 : f32
    %14 = vector.broadcast %cst_11 : f32 to vector<8x128xf32>
    %15 = arith.maximumf %13, %14 : vector<8x128xf32>
    %16 = arith.truncf %15 : vector<8x128xf32> to vector<8x128xbf16>
    %c0_12 = arith.constant 0 : index
    %c0_13 = arith.constant 0 : index
    %17 = vector.load %arg6[%c0_12, %c0_13] : memref<128x128xbf16, #tpu.memory_space<vmem>>, vector<128x128xbf16>
    %cst_14 = arith.constant dense<0.000000e+00> : vector<8x128xf32>
    %18 = tpu.matmul %16, %17, %cst_14 {dimension_numbers = #tpu.dot_dimension_numbers<[1], [0], [0], [1], [0, 0, 1, 1], [], []>} : vector<8x128xbf16>, vector<128x128xbf16>, vector<8x128xf32> -> vector<8x128xf32>
    %c0_15 = arith.constant 0 : index
    %c0_16 = arith.constant 0 : index
    %19 = vector.load %arg7[%c0_15, %c0_16] : memref<1x128xf32, #tpu.memory_space<vmem>>, vector<1x128xf32>
    %20 = vector.broadcast %19 : vector<1x128xf32> to vector<8x128xf32>
    %21 = arith.addf %18, %20 : vector<8x128xf32>
    %22 = math.tanh %21 : vector<8x128xf32>
    %c0_17 = arith.constant 0 : index
    %c0_18 = arith.constant 0 : index
    %23 = vector.load %arg8[%c0_17, %c0_18] : memref<8x128xf32, #tpu.memory_space<vmem>>, vector<8x128xf32>
    tpu.vector_store %arg8[%c0_17, %c0_18], %22 {strides = array<i32>} : memref<8x128xf32, #tpu.memory_space<vmem>>, vector<8x128xf32>,
    return
  }
  func.func @transform_0(%arg0: i32) -> (i32, i32) {
    %c0_i32 = arith.constant 0 : i32
    %c0_i32_0 = arith.constant 0 : i32
    return %arg0, %c0_i32 : i32, i32
  }
  func.func @transform_1(%arg0: i32) -> (i32, i32) {
    %c0_i32 = arith.constant 0 : i32
    %c0_i32_0 = arith.constant 0 : i32
    %c0_i32_1 = arith.constant 0 : i32
    return %c0_i32, %c0_i32_0 : i32, i32
  }
  func.func @transform_2(%arg0: i32) -> (i32, i32) {
    %c0_i32 = arith.constant 0 : i32
    %c0_i32_0 = arith.constant 0 : i32
    %c0_i32_1 = arith.constant 0 : i32
    return %c0_i32, %c0_i32_0 : i32, i32
  }
  func.func @transform_3(%arg0: i32) -> (i32, i32) {
    %c0_i32 = arith.constant 0 : i32
    %c0_i32_0 = arith.constant 0 : i32
    %c0_i32_1 = arith.constant 0 : i32
    return %c0_i32, %c0_i32_0 : i32, i32
  }
  func.func @transform_4(%arg0: i32) -> (i32, i32) {
    %c0_i32 = arith.constant 0 : i32
    %c0_i32_0 = arith.constant 0 : i32
    %c0_i32_1 = arith.constant 0 : i32
    return %c0_i32, %c0_i32_0 : i32, i32
  }
  func.func @transform_5(%arg0: i32) -> (i32, i32) {
    %c0_i32 = arith.constant 0 : i32
    %c0_i32_0 = arith.constant 0 : i32
    %c0_i32_1 = arith.constant 0 : i32
    return %c0_i32, %c0_i32_0 : i32, i32
  }
  func.func @transform_6(%arg0: i32) -> (i32, i32) {
    %c0_i32 = arith.constant 0 : i32
    %c0_i32_0 = arith.constant 0 : i32
    %c0_i32_1 = arith.constant 0 : i32
    return %c0_i32, %c0_i32_0 : i32, i32
  }
  func.func @transform_7(%arg0: i32) -> (i32, i32) {
    %c0_i32 = arith.constant 0 : i32
    %c0_i32_0 = arith.constant 0 : i32
    return %arg0, %c0_i32 : i32, i32
  }
}

</mosaic_0001>

<bundles_post_ra>
// kernel: tpu_custom_call.1
= control target key start
LH: loop header
LB: loop body
LE: loop exit
PB: predicated region body
PF: predicated region fallthrough
CT: control target
= control target key end

     0   :  { %12 = vsyncpa [#allocation3], 0  ;;  %s783_s0 = inlined_call_operand.hbm [shape: bf16[8,32], index: 0, kind: input, shape index: {}]   ;;  %s784_s1 = inlined_call_operand.hbm [shape: bf16[32,128], index: 1, kind: input, shape index: {}]   ;;  %s785_s2 = inlined_call_operand.vmem [shape: f32[1,128], index: 2, kind: input, shape index: {}]   ;;  %s786_s3 = inlined_call_operand.hbm [shape: bf16[128,128], index: 3, kind: input, shape index: {}]   ;;  %s787_s4 = inlined_call_operand.vmem [shape: f32[1,128], index: 4, kind: input, shape index: {}]   ;;  %s788_s5 = inlined_call_operand.hbm [shape: bf16[128,128], index: 5, kind: input, shape index: {}]   ;;  %s789_s6 = inlined_call_operand.vmem [shape: f32[1,128], index: 6, kind: input, shape index: {}]   ;;  %s790_s7 = inlined_call_operand.hbm [shape: f32[8,128], index: 7, kind: output, shape index: {}]  }
   0x1   :  { %13 = vsyncpa [#allocation6], 0 }
   0x2   :  { %14 = vsyncpa [#allocation9], 0 }
   0x3   :  { %15 = vsyncpa [#allocation4], 0  ;;  %s632_s24 = smov [#allocation5]   ;;  %s514_s28 = scalar_lea.hbm %s784_s1, 256 }
   0x4   :  { %s31_s25 = sshll.u32 %s632_s24, 4  ;;  %p515_p0 = scmp.ne.s32.totalorder %s784_s1, %s514_s28  ;;  %s32_s25 = int_to_ptr.vmem [resolvable:$true] %s31_s25 }
   0x5   :  { %p518_p1 = scmp.lt.u32.totalorder %s514_s28, %s784_s1 }
   0x7   :  { %p520_p2 = pnand %p518_p1, %p515_p0 }
   0x9   :  { %523 = shalt.err (!%p520_p2)
}
   0xa   :  { %s524_s10 = scalar_lea.vmem %s32_s25, 256  ;;  %p529_p4 = scmp.lt.s32.totalorder %s32_s25, %s32_s25 }
   0xb   :  { %p525_p3 = scmp.ne.s32.totalorder %s32_s25, %s524_s10  ;;  %p530_p5 = scmp.lt.s32.totalorder %s524_s10, %s524_s10 }
   0xd   :  { %p531_p6 = por %p530_p5, %p529_p4 }
   0xf   :  { %p532_p7 = pnand %p531_p6, %p525_p3 }
  0x11   :  { %535 = shalt.err (!%p532_p7)
}
  0x12   :  { %s633_s11 = smov 64   ;;  %s634_s12 = smov 4  }
  0x13   :  { %37 = dma.hbm_to_vmem [thread:$0]  %s784_s1, 256, %s32_s25, [#allocation6], %s633_s11, %s633_s11, %s634_s12  }
  0x14   :  { %s635_s15 = smov [#allocation2]   ;;  %s636_s17 = smov [#allocation7]  }
  0x15   :  { %s22_s16 = sshll.u32 %s635_s15, 4  ;;  %s45_s18 = sshll.u32 %s636_s17, 4  ;;  %s23_s16 = int_to_ptr.vmem [resolvable:$true] %s22_s16  ;;  %s46_s18 = int_to_ptr.vmem [resolvable:$true] %s45_s18 }
  0x16   :  { %s536_s21 = scalar_lea.hbm %s783_s0, 64 }
  0x17   :  { %p537_p8 = scmp.ne.s32.totalorder %s783_s0, %s536_s21  ;;  %p540_p9 = scmp.lt.u32.totalorder %s536_s21, %s783_s0 }
  0x19   :  { %p542_p10 = pnand %p540_p9, %p537_p8 }
  0x1b   :  { %545 = shalt.err (!%p542_p10)
}
  0x1c   :  { %s546_s1 = scalar_lea.vmem %s23_s16, 64  ;;  %p551_p12 = scmp.lt.s32.totalorder %s23_s16, %s23_s16 }
  0x1d   :  { %p547_p11 = scmp.ne.s32.totalorder %s23_s16, %s546_s1  ;;  %p552_p13 = scmp.lt.s32.totalorder %s546_s1, %s546_s1 }
  0x1f   :  { %p553_p0 = por %p552_p13, %p551_p12 }
  0x21   :  { %p554_p1 = pnand %p553_p0, %p547_p11 }
  0x23   :  { %557 = shalt.err (!%p554_p1)
}
  0x24   :  { %25 = dma.hbm_to_vmem [thread:$0]  %s783_s0, 64, %s23_s16, [#allocation3]  }
  0x25   :  { %s558_s30 = scalar_lea.hbm %s786_s3, 1024 }
  0x26   :  { %p559_p2 = scmp.ne.s32.totalorder %s786_s3, %s558_s30  ;;  %p562_p3 = scmp.lt.u32.totalorder %s558_s30, %s786_s3 }
  0x28   :  { %p564_p4 = pnand %p562_p3, %p559_p2 }
  0x2a   :  { %567 = shalt.err (!%p564_p4)
}
  0x2b   :  { %s568_s14 = scalar_lea.vmem %s46_s18, 1024  ;;  %p573_p6 = scmp.lt.s32.totalorder %s46_s18, %s46_s18 }
  0x2c   :  { %p569_p5 = scmp.ne.s32.totalorder %s46_s18, %s568_s14  ;;  %p574_p7 = scmp.lt.s32.totalorder %s568_s14, %s568_s14 }
  0x2e   :  { %p575_p8 = por %p574_p7, %p573_p6 }
  0x30   :  { %p576_p9 = pnand %p575_p8, %p569_p5 }
  0x32   :  { %579 = shalt.err (!%p576_p9)
}
  0x33   :  { %51 = dma.hbm_to_vmem [thread:$0]  %s786_s3, 1024, %s46_s18, [#allocation6], %s633_s11, %s633_s11, %s634_s12  }
  0x34   :  { %s637_s16 = smov [#allocation8]   ;;  %s580_s21 = scalar_lea.hbm %s788_s5, 1024 }
  0x35   :  { %s59_s17 = sshll.u32 %s637_s16, 4  ;;  %p581_p10 = scmp.ne.s32.totalorder %s788_s5, %s580_s21  ;;  %s60_s17 = int_to_ptr.vmem [resolvable:$true] %s59_s17 }
  0x36   :  { %p584_p11 = scmp.lt.u32.totalorder %s580_s21, %s788_s5 }
  0x38   :  { %p586_p12 = pnand %p584_p11, %p581_p10 }
  0x3a   :  { %589 = shalt.err (!%p586_p12)
}
  0x3b   :  { %s590_s1 = scalar_lea.vmem %s60_s17, 1024  ;;  %p595_p0 = scmp.lt.s32.totalorder %s60_s17, %s60_s17 }
  0x3c   :  { %p591_p13 = scmp.ne.s32.totalorder %s60_s17, %s590_s1  ;;  %p596_p1 = scmp.lt.s32.totalorder %s590_s1, %s590_s1 }
  0x3e   :  { %p597_p2 = por %p596_p1, %p595_p0 }
  0x40   :  { %p598_p3 = pnand %p597_p2, %p591_p13 }
  0x42   :  { %601 = shalt.err (!%p598_p3)
}
  0x43   :  { %65 = dma.hbm_to_vmem [thread:$0]  %s788_s5, 1024, %s60_s17, [#allocation9], %s633_s11, %s633_s11, %s634_s12  }
  0x44   :  { %624 = dma.done.wait [#allocation3], 64  }
  0x45   :  { %625 = vsyncadd [#allocation3], 4294967232 }
  0x46   :  { %626 = dma.done.wait [#allocation6], 1280  }
  0x47   :  { %627 = vsyncadd [#allocation6], 4294966016 }
  0x48   :  { %628 = dma.done.wait [#allocation9], 1024  }
  0x49   :  { %629 = vsyncadd [#allocation9], 4294966272  ;;  %v638_v0 = vmov 0.0   ;;  %vm639_vm0 = vmmov 0   ;;  %v494_v1 = vld [vmem:[#allocation5] sm:$0xff]   ;;  %v495_v2 = vld [vmem:[#allocation5 + $0x8] sm:$0xff]  }
  0x4a   :  { %437 = vmatprep.subr.bf16.mxu0 %v638_v0  ;;  %441 = vmatprep.mubr.msk.bf16.mxu0 %vm639_vm0, %v638_v0  ;;  %v496_v3 = vld [vmem:[#allocation7] sm:$0xff]   ;;  %vm105_vm1 = vcmask 261120   ;;  %v497_v4 = vld [vmem:[#allocation7 + $0x8] sm:$0xff]   ;;  %v498_v6 = vld [vmem:[#allocation7 + $0x10] sm:$0xff]   ;;  %s640_s28 = smov [#allocation10]  }
  0x4b   :  { %445 = vmatprep.subr.bf16.mxu1 %v638_v0  ;;  %461 = vmatprep.mubr.msk.bf16.mxu1 %vm639_vm0, %v638_v0  ;;  %v81_v5 = vld [vmem:[#allocation2] sm:$0xf]  ;;  %v499_v7 = vld [vmem:[#allocation7 + $0x18] sm:$0xff]   ;;  %v500_v8 = vld [vmem:[#allocation7 + $0x20] sm:$0xff]  }
  0x4c   :  { %438 = vmatpush3.bf16.msra.mxu0 %v494_v1  ;;  %446 = vmatpush3.bf16.msra.mxu1 %v496_v3  ;;  %v501_v9 = vld [vmem:[#allocation7 + $0x28] sm:$0xff]   ;;  %v502_v10 = vld [vmem:[#allocation7 + $0x30] sm:$0xff]   ;;  %v503_v11 = vld [vmem:[#allocation7 + $0x38] sm:$0xff]  }
  0x4d   :  { %439 = vmatprep.subr.bf16.mxu0 %v638_v0  ;;  %447 = vmatprep.subr.bf16.mxu1 %v638_v0  ;;  %v504_v12 = vld [vmem:[#allocation8] sm:$0xff]   ;;  %v505_v13 = vld [vmem:[#allocation8 + $0x8] sm:$0xff]   ;;  %v506_v14 = vld [vmem:[#allocation8 + $0x10] sm:$0xff]  }
  0x4e   :  { %v507_v15 = vld [vmem:[#allocation8 + $0x18] sm:$0xff]   ;;  %v508_v16 = vld [vmem:[#allocation8 + $0x20] sm:$0xff]   ;;  %v509_v17 = vld [vmem:[#allocation8 + $0x28] sm:$0xff]  }
  0x4f   :  { %v394_v18 = vld [vmem:[%s785_s2] ss:$0 sm:$0xff]  ;;  %v510_v26 = vld [vmem:[#allocation8 + $0x30] sm:$0xff]   ;;  %v511_v27 = vld [vmem:[#allocation8 + $0x38] sm:$0xff]  }
  0x50   :  { %440 = vmatpush3.bf16.msra.mxu0 %v495_v2  ;;  %448 = vmatpush3.bf16.msra.mxu1 %v497_v4  ;;  %v398_v28 = vld [vmem:[%s787_s4] ss:$0 sm:$0xff]  ;;  %s383_s4 = sshll.u32 %s640_s28, 4  ;;  %s384_s4 = int_to_ptr.vmem [resolvable:$true] %s383_s4 }
  0x51   :  { %465 = vmatprep.subr.bf16.mxu0 %v638_v0  ;;  %449 = vmatprep.subr.bf16.mxu1 %v638_v0  ;;  %v407_v36 = vld [vmem:[%s789_s6] ss:$0 sm:$0xff]  ;;  %s602_s29 = scalar_lea.vmem %s384_s4, 128  ;;  %p607_p5 = scmp.lt.s32.totalorder %s384_s4, %s384_s4 }
  0x52   :  { %p603_p4 = scmp.ne.s32.totalorder %s384_s4, %s602_s29  ;;  %p608_p6 = scmp.lt.s32.totalorder %s602_s29, %s602_s29 }
  0x53   :  { %442 = vmatmul.mubr.msk.bf16.vlgmr.msra.gmra.mrb[0].mxu0 %vm105_vm1, %v81_v5 }
  0x54   :  { %481 = vmatprep.mubr.msk.bf16.mxu0 %vm639_vm0, %v638_v0  ;;  %450 = vmatpush3.bf16.msra.mxu1 %v498_v6  ;;  %p609_p7 = por %p608_p6, %p607_p5 }
  0x55   :  { %451 = vmatprep.subr.bf16.mxu1 %v638_v0  ;;  %466 = vmatpush3.bf16.msra.mxu0 %v504_v12 }
  0x56   :  { %467 = vmatprep.subr.bf16.mxu0 %v638_v0  ;;  %p610_p8 = pnand %p609_p7, %p603_p4 }
  0x58   :  { %452 = vmatpush3.bf16.msra.mxu1 %v499_v7 }
  0x59   :  { %453 = vmatprep.subr.bf16.mxu1 %v638_v0  ;;  %468 = vmatpush3.bf16.msra.mxu0 %v505_v13 }
  0x5a   :  { %469 = vmatprep.subr.bf16.mxu0 %v638_v0 }
  0x5c   :  { %454 = vmatpush3.bf16.msra.mxu1 %v500_v8 }
  0x5d   :  { %455 = vmatprep.subr.bf16.mxu1 %v638_v0  ;;  %470 = vmatpush3.bf16.msra.mxu0 %v506_v14 }
  0x5e   :  { %471 = vmatprep.subr.bf16.mxu0 %v638_v0 }
  0x60   :  { %456 = vmatpush3.bf16.msra.mxu1 %v501_v9 }
  0x61   :  { %457 = vmatprep.subr.bf16.mxu1 %v638_v0  ;;  %472 = vmatpush3.bf16.msra.mxu0 %v507_v15 }
  0x62   :  { %473 = vmatprep.subr.bf16.mxu0 %v638_v0 }
  0x64   :  { %458 = vmatpush3.bf16.msra.mxu1 %v502_v10 }
  0x65   :  { %459 = vmatprep.subr.bf16.mxu1 %v638_v0  ;;  %474 = vmatpush3.bf16.msra.mxu0 %v508_v16 }
  0x66   :  { %475 = vmatprep.subr.bf16.mxu0 %v638_v0 }
  0x68   :  { %460 = vmatpush3.bf16.msra.mxu1 %v503_v11 }
  0x69   :  { %476 = vmatpush3.bf16.msra.mxu0 %v509_v17 }
  0x6a   :  { %477 = vmatprep.subr.bf16.mxu0 %v638_v0 }
  0x6d   :  { %478 = vmatpush3.bf16.msra.mxu0 %v510_v26 }
  0x6e   :  { %479 = vmatprep.subr.bf16.mxu0 %v638_v0 }
  0x71   :  { %480 = vmatpush3.bf16.msra.mxu0 %v511_v27 }
 0x126   :  { %v143_v19 = vpop.f32.mrb[0].mxu0 }
 0x127   :  { %v144_v20 = vadd.f32 %v394_v18, %v143_v19  ;;  %v443_v21 = vpop.f32.mrb[1].mxu0 }
 0x128   :  { %v146_v22 = vpop.f32.mrb[2].mxu0 }
 0x129   :  { %v149_v23 = vmax.f32 %v144_v20, 0.0  ;;  %v444_v24 = vpop.f32.mrb[3].mxu0 }
 0x12b   :  { %v150_v25 = vpack.c.bf16 %v149_v23, %v149_v23 }
 0x12d   :  { %462 = vmatmul.mubr.bf16.vlgmr.msra.gmra.mrb[0].mxu1 %v150_v25 }
 0x200   :  { %v256_v29 = vpop.f32.mrb[0].mxu1 }
 0x201   :  { %v257_v30 = vadd.f32 %v398_v28, %v256_v29  ;;  %v463_v31 = vpop.f32.mrb[1].mxu1 }
 0x202   :  { %v259_v32 = vpop.f32.mrb[2].mxu1 }
 0x203   :  { %v262_v33 = vmax.f32 %v257_v30, 0.0  ;;  %v464_v34 = vpop.f32.mrb[3].mxu1 }
 0x205   :  { %v263_v35 = vpack.c.bf16 %v262_v33, %v262_v33 }
 0x207   :  { %482 = vmatmul.mubr.bf16.vlgmr.msra.gmra.mrb[4].mxu0 %v263_v35 }
 0x2da   :  { %v369_v37 = vpop.f32.mrb[4].mxu0 }
 0x2db   :  { %v370_v38 = vadd.f32 %v407_v36, %v369_v37  ;;  %v483_v39 = vpop.f32.mrb[5].mxu0 }
 0x2dc   :  { %v372_v40 = vpop.f32.mrb[6].mxu0 }
 0x2dd   :  { %512 = vtanh.f32 %v370_v38  ;;  %v484_v41 = vpop.f32.mrb[7].mxu0 }
 0x2e7   :  { %v513_v42 = vpop.eup %512 }
 0x2e8   :  { %376 = vst [vmem:[#allocation10] sm:$0xff] %v513_v42 }
 0x2e9   :  { %613 = shalt.err (!%p610_p8)
}
 0x2ea   :  { %s614_s8 = scalar_lea.hbm %s790_s7, 128 }
 0x2eb   :  { %p615_p9 = scmp.ne.s32.totalorder %s790_s7, %s614_s8  ;;  %p618_p10 = scmp.lt.u32.totalorder %s614_s8, %s790_s7 }
 0x2ed   :  { %p620_p11 = pnand %p618_p10, %p615_p9 }
 0x2ef   :  { %623 = shalt.err (!%p620_p11)
}
 0x2f0   :  { %386 = dma.vmem_to_hbm [thread:$0]  %s384_s4, 128, %s790_s7, [#allocation4]  }
 0x2f1   :  { %630 = dma.done.wait [#allocation4], 128  }
 0x2f2   :  { %631 = vsyncadd [#allocation4], 4294967168 }
 0x2f3   :  { %390 = vsyncpa [#allocation3], 1 }
 0x2f4   :  { %391 = vsyncpa [#allocation6], 1 }
 0x2f5   :  { %392 = vsyncpa [#allocation9], 1 }
 0x2f6   :  { %393 = vsyncpa [#allocation4], 1 }

</bundles_post_ra>
